<compile_context>
chip_gen: v5e
topology: v5e:2x2
jax: 0.10.0
libtpu: 0.0.40
codegen_flags: <defaults>
</compile_context>

<pallas_src>
import functools
import math

import jax
import jax.numpy as jnp
from jax.experimental import pallas as pl
from jax.experimental.pallas import tpu as pltpu

_LANE = 128
_SUBLANE = 8
_NEG_BIG = -1e30  # softmax padding logit; exp(-1e30 - max) underflows to exactly 0.


def _round_up(n, m):
    return (n + m - 1) // m * m


def vae_kernel(x_ref, eps_ref,
               ew1_ref, eb1_ref, ew2_ref, eb2_ref,
               mlw_ref, mlb_ref,
               fw_ref, fb_ref,
               dw1_ref, db1_ref, dw2_ref, db2_ref,
               small_ref, xr_ref,
               *, num_topics, heads_width):
    T = num_topics

    # ---- encoder: Linear(V, 2H) -> ReLU -> Linear(2H, H) -> ReLU ----------
    # enc_w1 stays bf16 (no weight upcast); cast the small activation instead
    # so the MXU runs its native bf16 path with f32 accumulation.
    x = x_ref[...].astype(jnp.bfloat16)
    h1 = jnp.dot(x, ew1_ref[...], preferred_element_type=jnp.float32) + eb1_ref[...]
    h1 = jnp.maximum(h1, 0.0)
    h2 = jnp.dot(h1, ew2_ref[...], preferred_element_type=jnp.float32) + eb2_ref[...]
    h2 = jnp.maximum(h2, 0.0)

    # ---- fused mu/log_var head: one (H, Wm) matmul, Wm a 128 multiple ------
    # (weights zero-padded in the wrapper, so padded columns are exactly 0).
    ml = jnp.dot(h2, mlw_ref[...], preferred_element_type=jnp.float32) + mlb_ref[...]
    mu = ml[:, :T]
    log_var = ml[:, T:2 * T]

    # ---- reparameterize: z = mu + eps * exp(log_var / 2) -------------------
    z = mu + eps_ref[...] * jnp.exp(log_var * 0.5)

    # ---- fc1 + softmax over the last dim -----------------------------------
    # fc1 is padded to 128 lanes with a -1e30 bias on the padding columns, so
    # they softmax to exactly 0 and the store stays lane-dense.
    t = jnp.dot(z, fw_ref[...], preferred_element_type=jnp.float32) + fb_ref[...]
    t = t - jnp.max(t, axis=-1, keepdims=True)
    et = jnp.exp(t)
    # approx reciprocal rides in the otherwise-idle EUP slot; theta rows sum
    # to 1 +- ~1e-3 (renormalize in the wrapper if it feeds a KL/NLL loss).
    theta = et * pl.reciprocal(jnp.sum(et, axis=-1, keepdims=True), approx=True)

    # ---- decoder: Linear(T, H) -> ReLU -> Linear(H, V) ---------------------
    # dec_w1 rows / dec_w2 columns are zero-padded in the wrapper, so the
    # padded theta columns contribute nothing and xr padding columns are 0.
    d1 = jnp.dot(theta, dw1_ref[...], preferred_element_type=jnp.float32) + db1_ref[...]
    d1 = jnp.maximum(d1, 0.0)
    xr = jnp.dot(d1.astype(jnp.bfloat16), dw2_ref[...],
                 preferred_element_type=jnp.float32) + db2_ref[...]

    # Lane-dense stores: one combined [mu | log_var | 0.. || theta | 0..] slab
    # (both regions 128-aligned and 128-wide multiples) + padded reconstruction.
    theta_width = theta.shape[-1]
    small_ref[:, :heads_width] = ml
    small_ref[:, heads_width:heads_width + theta_width] = theta
    xr_ref[...] = xr


def vae_forward(x, eps, params, *, num_batch_steps=2):
    B, V = x.shape
    T = params["fc1_w"].shape[0]
    H = params["enc_w2"].shape[1]
    f32 = jnp.float32

    # Lane-dense padded widths for the small outputs / reconstruction.
    Wm = _round_up(2 * T, _LANE)   # [mu | log_var | 0...]
    Wt = _round_up(T, _LANE)       # [theta | 0...]
    Vp = _round_up(V, _LANE)       # [x_reconst | 0...]

    # Fused + zero-padded mu/log_var head: one (H, Wm) weight.
    mlw = (jnp.zeros((H, Wm), f32)
           .at[:, :T].set(params["mu_w"])
           .at[:, T:2 * T].set(params["lv_w"]))
    mlb = (jnp.zeros((1, Wm), f32)
           .at[:, :T].set(params["mu_b"])
           .at[:, T:2 * T].set(params["lv_b"]))
    # fc1 padded to Wt lanes; padding logits get a huge negative bias so the
    # padded softmax columns are exactly 0.
    fw = jnp.zeros((T, Wt), f32).at[:, :T].set(params["fc1_w"])
    fb = jnp.full((1, Wt), _NEG_BIG, f32).at[:, :T].set(params["fc1_b"])
    # Decoder weights padded to match the theta / reconstruction padding.
    dw1 = jnp.zeros((Wt, H), f32).at[:T, :].set(params["dec_w1"])
    db1 = params["dec_b1"]
    dw2 = jnp.zeros((H, Vp), jnp.bfloat16).at[:, :V].set(params["dec_w2"])
    db2 = jnp.zeros((1, Vp), f32).at[:, :V].set(params["dec_b2"])

    # Batch tiling: smallest 8-aligned tile covering B in num_batch_steps
    # steps (>=2 keeps both v7x TensorCores busy via "parallel"; v5e/v6e pay
    # only ~0.35us for the extra step).  B=200 -> 104 x 2 (8 padded rows).
    num_batch_steps = max(1, int(num_batch_steps))
    tile_b = _round_up(max(pl.cdiv(B, num_batch_steps), _SUBLANE), _SUBLANE)
    Bp = _round_up(B, tile_b)
    if Bp != B:
        x = jnp.pad(x, ((0, Bp - B), (0, 0)))
        eps = jnp.pad(eps, ((0, Bp - B), (0, 0)))
    grid = (Bp // tile_b,)

    inputs = (
        x, eps,
        params["enc_w1"], params["enc_b1"],
        params["enc_w2"], params["enc_b2"],
        mlw, mlb,
        fw, fb,
        dw1, db1, dw2, db2,
    )

    def batch_map(i):
        return (i, 0)

    def const_map(i):
        return (0, 0)

    # TODO(synk): for production vocab sizes (V ~ 30k+) stream enc_w1 / dec_w2
    # over a vocab grid axis (f32 accumulator + pl.when init/finalize for the
    # encoder, V-tiled xr output for the decoder), single-buffer the constant
    # weight blocks (pipeline_mode=pl.Buffered(1)), and stream x / x_reconst
    # in bf16; at these test sizes whole-array resident blocks are fine.
    in_specs = [
        pl.BlockSpec((tile_b, V), batch_map),   # x: tiled over batch
        pl.BlockSpec((tile_b, T), batch_map),   # eps: tiled over batch
    ] + [pl.BlockSpec(a.shape, const_map) for a in inputs[2:]]

    out_shapes = (
        jax.ShapeDtypeStruct((Bp, Wm + Wt), f32),   # [mu | log_var | theta] padded
        jax.ShapeDtypeStruct((Bp, Vp), f32),        # x_reconst padded
    )
    out_specs = (
        pl.BlockSpec((tile_b, Wm + Wt), batch_map),
        pl.BlockSpec((tile_b, Vp), batch_map),
    )

    # VMEM budget derived from the actual footprint (double-buffered blocks +
    # headroom), capped well under the 64 MiB v7x VMEM.
    def nbytes(shape, dtype):
        return math.prod(shape) * jnp.dtype(dtype).itemsize

    block_bytes = (
        nbytes((tile_b, V), x.dtype)
        + nbytes((tile_b, T), eps.dtype)
        + sum(int(a.size) * a.dtype.itemsize for a in inputs[2:])
        + nbytes((tile_b, Wm + Wt), f32)
        + nbytes((tile_b, Vp), f32)
    )
    vmem_limit = min(max(2 * block_bytes + (8 << 20), 16 << 20), 48 << 20)

    flops = 2 * Bp * (V * 2 * H + 2 * H * H + H * Wm + T * Wt + Wt * H + H * Vp)
    bytes_accessed = (
        sum(int(a.size) * a.dtype.itemsize for a in inputs)
        + sum(math.prod(s.shape) * jnp.dtype(s.dtype).itemsize for s in out_shapes)
    )

    kernel = functools.partial(vae_kernel, num_topics=T, heads_width=Wm)

    small, xr = pl.pallas_call(
        kernel,
        out_shape=out_shapes,
        grid=grid,
        in_specs=in_specs,
        out_specs=out_specs,
        compiler_params=pltpu.CompilerParams(
            dimension_semantics=("parallel",),
            vmem_limit_bytes=vmem_limit,
        ),
        cost_estimate=pl.CostEstimate(
            flops=flops,
            transcendentals=Bp * (T + Wt + 1),
            bytes_accessed=bytes_accessed,
        ),
    )(*inputs)

    # Slice the lane-dense slabs back to the logical shapes (and drop padding).
    mu = small[:B, :T]
    log_var = small[:B, T:2 * T]
    theta = small[:B, Wm:Wm + T]
    x_reconst = xr[:B, :V]
    return mu, log_var, x_reconst, theta


def init_params(key, vocab_size, num_topics, hid_size):
    """Deterministic Kaiming-uniform-like init. Weights stored as (in, out).

    The two large, bandwidth-dominant weights (enc_w1, dec_w2) are stored in
    bfloat16 and consumed natively by the MXU (f32 accumulation in-kernel);
    everything else stays float32.
    """
    def linear(key, fan_in, fan_out):
        kw, kb = jax.random.split(key)
        bound = 1.0 / jnp.sqrt(fan_in)
        w = jax.random.uniform(kw, (fan_in, fan_out), jnp.float32, -bound, bound)
        b = jax.random.uniform(kb, (1, fan_out), jnp.float32, -bound, bound)
        return w, b

    keys = jax.random.split(key, 7)
    p = {}
    p["enc_w1"], p["enc_b1"] = linear(keys[0], vocab_size, hid_size * 2)
    p["enc_w2"], p["enc_b2"] = linear(keys[1], hid_size * 2, hid_size)
    p["mu_w"], p["mu_b"] = linear(keys[2], hid_size, num_topics)
    p["lv_w"], p["lv_b"] = linear(keys[3], hid_size, num_topics)
    p["fc1_w"], p["fc1_b"] = linear(keys[4], num_topics, num_topics)
    p["dec_w1"], p["dec_b1"] = linear(keys[5], num_topics, hid_size)
    p["dec_w2"], p["dec_b2"] = linear(keys[6], hid_size, vocab_size)
    p["enc_w1"] = p["enc_w1"].astype(jnp.bfloat16)
    p["dec_w2"] = p["dec_w2"].astype(jnp.bfloat16)
    return p


def vae_forward_ref(x, eps, p):
    """Pure-JAX reference with the same bf16-storage semantics as the kernel."""
    h1 = jnp.maximum(
        jnp.dot(x.astype(jnp.bfloat16), p["enc_w1"],
                preferred_element_type=jnp.float32) + p["enc_b1"], 0.0)
    h2 = jnp.maximum(h1 @ p["enc_w2"] + p["enc_b2"], 0.0)
    mu = h2 @ p["mu_w"] + p["mu_b"]
    log_var = h2 @ p["lv_w"] + p["lv_b"]
    z = mu + eps * jnp.exp(log_var / 2.0)
    t = z @ p["fc1_w"] + p["fc1_b"]
    theta = jax.nn.softmax(t, axis=-1)
    d1 = jnp.maximum(theta @ p["dec_w1"] + p["dec_b1"], 0.0)
    xr = jnp.dot(d1.astype(jnp.bfloat16), p["dec_w2"],
                 preferred_element_type=jnp.float32) + p["dec_b2"]
    return mu, log_var, xr, theta


if __name__ == "__main__":
    B = 200          # batch: 2 grid steps of 104 rows (Bp = 208)
    VOCAB = 32       # vocab_size (bag-of-words dim)
    TOPICS = 8       # num_topics
    HID = 32         # hid_size

    key = jax.random.PRNGKey(0)
    k_x, k_eps, k_p = jax.random.split(key, 3)

    # bag-of-words like non-negative input
    x = jax.random.uniform(k_x, (B, VOCAB), jnp.float32, 0.0, 3.0)
    # reparameterization noise (randn_like equivalent, supplied deterministically)
    eps = jax.random.normal(k_eps, (B, TOPICS), jnp.float32)

    params = init_params(k_p, VOCAB, TOPICS, HID)

    mu, log_var, x_reconst, theta = jax.block_until_ready(
        jax.jit(vae_forward)(x, eps, params))

    mu_r, lv_r, xr_r, th_r = vae_forward_ref(x, eps, params)

    # mu / log_var: f32 head path (tolerance relaxed slightly for MXU pass
    # ordering); theta / x_reconst additionally carry the approx-reciprocal
    # softmax and bf16 decoder matmul, so their tolerances are looser.
    assert jnp.allclose(mu, mu_r, atol=1e-4, rtol=1e-4)
    assert jnp.allclose(log_var, lv_r, atol=1e-4, rtol=1e-4)
    assert jnp.allclose(theta, th_r, atol=2e-3, rtol=2e-3)
    assert jnp.allclose(x_reconst, xr_r, atol=3e-2, rtol=3e-2)

    print("KERNEL_OK")
</pallas_src>

<mosaic_0001>
module attributes {stable_mosaic.version = 11 : i64} {
  func.func @vae_kernel(%arg0: i32, %arg1: memref<104x32xf32, #tpu.memory_space<vmem>>, %arg2: memref<104x8xf32, #tpu.memory_space<vmem>>, %arg3: memref<32x64xbf16, #tpu.memory_space<vmem>>, %arg4: memref<1x64xf32, #tpu.memory_space<vmem>>, %arg5: memref<64x32xf32, #tpu.memory_space<vmem>>, %arg6: memref<1x32xf32, #tpu.memory_space<vmem>>, %arg7: memref<32x128xf32, #tpu.memory_space<vmem>>, %arg8: memref<1x128xf32, #tpu.memory_space<vmem>>, %arg9: memref<8x128xf32, #tpu.memory_space<vmem>>, %arg10: memref<1x128xf32, #tpu.memory_space<vmem>>, %arg11: memref<128x32xf32, #tpu.memory_space<vmem>>, %arg12: memref<1x32xf32, #tpu.memory_space<vmem>>, %arg13: memref<32x128xbf16, #tpu.memory_space<vmem>>, %arg14: memref<1x128xf32, #tpu.memory_space<vmem>>, %arg15: memref<104x256xf32, #tpu.memory_space<vmem>>, %arg16: memref<104x128xf32, #tpu.memory_space<vmem>>) attributes {dimension_semantics = [#tpu.dimension_semantics<parallel>], iteration_bounds = array<i64: 2>, scalar_prefetch = 0 : i64, scratch_operands = 0 : i64, tpu.core_type = #tpu.core_type<tc>, window_params = [{transform_indices = @transform_0, window_bounds = array<i64: 104, 32>}, {transform_indices = @transform_1, window_bounds = array<i64: 104, 8>}, {pipeline_mode = #tpu.pipeline_mode<synchronous>, transform_indices = @transform_2, window_bounds = array<i64: 32, 64>}, {pipeline_mode = #tpu.pipeline_mode<synchronous>, transform_indices = @transform_3, window_bounds = array<i64: 1, 64>}, {pipeline_mode = #tpu.pipeline_mode<synchronous>, transform_indices = @transform_4, window_bounds = array<i64: 64, 32>}, {pipeline_mode = #tpu.pipeline_mode<synchronous>, transform_indices = @transform_5, window_bounds = array<i64: 1, 32>}, {pipeline_mode = #tpu.pipeline_mode<synchronous>, transform_indices = @transform_6, window_bounds = array<i64: 32, 128>}, {pipeline_mode = #tpu.pipeline_mode<synchronous>, transform_indices = @transform_7, window_bounds = array<i64: 1, 128>}, {pipeline_mode = #tpu.pipeline_mode<synchronous>, transform_indices = @transform_8, window_bounds = array<i64: 8, 128>}, {pipeline_mode = #tpu.pipeline_mode<synchronous>, transform_indices = @transform_9, window_bounds = array<i64: 1, 128>}, {pipeline_mode = #tpu.pipeline_mode<synchronous>, transform_indices = @transform_10, window_bounds = array<i64: 128, 32>}, {pipeline_mode = #tpu.pipeline_mode<synchronous>, transform_indices = @transform_11, window_bounds = array<i64: 1, 32>}, {pipeline_mode = #tpu.pipeline_mode<synchronous>, transform_indices = @transform_12, window_bounds = array<i64: 32, 128>}, {pipeline_mode = #tpu.pipeline_mode<synchronous>, transform_indices = @transform_13, window_bounds = array<i64: 1, 128>}, {transform_indices = @transform_14, window_bounds = array<i64: 104, 256>}, {transform_indices = @transform_15, window_bounds = array<i64: 104, 128>}]} {
    %c0 = arith.constant 0 : index
    %c0_0 = arith.constant 0 : index
    %0 = vector.load %arg1[%c0, %c0_0] : memref<104x32xf32, #tpu.memory_space<vmem>>, vector<104x32xf32>
    %1 = arith.truncf %0 : vector<104x32xf32> to vector<104x32xbf16>
    %c0_1 = arith.constant 0 : index
    %c0_2 = arith.constant 0 : index
    %2 = vector.load %arg3[%c0_1, %c0_2] : memref<32x64xbf16, #tpu.memory_space<vmem>>, vector<32x64xbf16>
    %cst = arith.constant dense<0.000000e+00> : vector<104x64xf32>
    %3 = tpu.matmul %1, %2, %cst {dimension_numbers = #tpu.dot_dimension_numbers<[1], [0], [0], [1], [0, 0, 1, 1], [], []>} : vector<104x32xbf16>, vector<32x64xbf16>, vector<104x64xf32> -> vector<104x64xf32>
    %c0_3 = arith.constant 0 : index
    %c0_4 = arith.constant 0 : index
    %4 = vector.load %arg4[%c0_3, %c0_4] : memref<1x64xf32, #tpu.memory_space<vmem>>, vector<1x64xf32>
    %5 = vector.broadcast %4 : vector<1x64xf32> to vector<104x64xf32>
    %6 = arith.addf %3, %5 : vector<104x64xf32>
    %cst_5 = arith.constant 0.000000e+00 : f32
    %7 = vector.broadcast %cst_5 : f32 to vector<104x64xf32>
    %8 = arith.maximumf %6, %7 : vector<104x64xf32>
    %c0_6 = arith.constant 0 : index
    %c0_7 = arith.constant 0 : index
    %9 = vector.load %arg5[%c0_6, %c0_7] : memref<64x32xf32, #tpu.memory_space<vmem>>, vector<64x32xf32>
    %cst_8 = arith.constant dense<0.000000e+00> : vector<104x32xf32>
    %10 = tpu.matmul %8, %9, %cst_8 {dimension_numbers = #tpu.dot_dimension_numbers<[1], [0], [0], [1], [0, 0, 1, 1], [], []>} : vector<104x64xf32>, vector<64x32xf32>, vector<104x32xf32> -> vector<104x32xf32>
    %c0_9 = arith.constant 0 : index
    %c0_10 = arith.constant 0 : index
    %11 = vector.load %arg6[%c0_9, %c0_10] : memref<1x32xf32, #tpu.memory_space<vmem>>, vector<1x32xf32>
    %12 = vector.broadcast %11 : vector<1x32xf32> to vector<104x32xf32>
    %13 = arith.addf %10, %12 : vector<104x32xf32>
    %cst_11 = arith.constant 0.000000e+00 : f32
    %14 = vector.broadcast %cst_11 : f32 to vector<104x32xf32>
    %15 = arith.maximumf %13, %14 : vector<104x32xf32>
    %c0_12 = arith.constant 0 : index
    %c0_13 = arith.constant 0 : index
    %16 = vector.load %arg7[%c0_12, %c0_13] : memref<32x128xf32, #tpu.memory_space<vmem>>, vector<32x128xf32>
    %cst_14 = arith.constant dense<0.000000e+00> : vector<104x128xf32>
    %17 = tpu.matmul %15, %16, %cst_14 {dimension_numbers = #tpu.dot_dimension_numbers<[1], [0], [0], [1], [0, 0, 1, 1], [], []>} : vector<104x32xf32>, vector<32x128xf32>, vector<104x128xf32> -> vector<104x128xf32>
    %c0_15 = arith.constant 0 : index
    %c0_16 = arith.constant 0 : index
    %18 = vector.load %arg8[%c0_15, %c0_16] : memref<1x128xf32, #tpu.memory_space<vmem>>, vector<1x128xf32>
    %19 = vector.broadcast %18 : vector<1x128xf32> to vector<104x128xf32>
    %20 = arith.addf %17, %19 : vector<104x128xf32>
    %21 = vector.extract_strided_slice %20 {offsets = [0, 0], sizes = [104, 8], strides = [1, 1]} : vector<104x128xf32> to vector<104x8xf32>
    %22 = vector.extract_strided_slice %20 {offsets = [0, 8], sizes = [104, 8], strides = [1, 1]} : vector<104x128xf32> to vector<104x8xf32>
    %c0_17 = arith.constant 0 : index
    %c0_18 = arith.constant 0 : index
    %23 = vector.load %arg2[%c0_17, %c0_18] : memref<104x8xf32, #tpu.memory_space<vmem>>, vector<104x8xf32>
    %cst_19 = arith.constant 5.000000e-01 : f32
    %24 = vector.broadcast %cst_19 : f32 to vector<104x8xf32>
    %25 = arith.mulf %22, %24 : vector<104x8xf32>
    %26 = math.exp %25 : vector<104x8xf32>
    %27 = arith.mulf %23, %26 : vector<104x8xf32>
    %28 = arith.addf %21, %27 : vector<104x8xf32>
    %c0_20 = arith.constant 0 : index
    %c0_21 = arith.constant 0 : index
    %29 = vector.load %arg9[%c0_20, %c0_21] : memref<8x128xf32, #tpu.memory_space<vmem>>, vector<8x128xf32>
    %cst_22 = arith.constant dense<0.000000e+00> : vector<104x128xf32>
    %30 = tpu.matmul %28, %29, %cst_22 {dimension_numbers = #tpu.dot_dimension_numbers<[1], [0], [0], [1], [0, 0, 1, 1], [], []>} : vector<104x8xf32>, vector<8x128xf32>, vector<104x128xf32> -> vector<104x128xf32>
    %c0_23 = arith.constant 0 : index
    %c0_24 = arith.constant 0 : index
    %31 = vector.load %arg10[%c0_23, %c0_24] : memref<1x128xf32, #tpu.memory_space<vmem>>, vector<1x128xf32>
    %32 = vector.broadcast %31 : vector<1x128xf32> to vector<104x128xf32>
    %33 = arith.addf %30, %32 : vector<104x128xf32>
    %cst_25 = arith.constant dense<0xFF800000> : vector<104xf32>
    %34 = vector.multi_reduction <maximumf>, %33, %cst_25 [1] : vector<104x128xf32> to vector<104xf32>
    %35 = vector.shape_cast %34 : vector<104xf32> to vector<104x1xf32>
    %36 = vector.broadcast %35 : vector<104x1xf32> to vector<104x128xf32>
    %37 = arith.subf %33, %36 : vector<104x128xf32>
    %38 = math.exp %37 : vector<104x128xf32>
    %cst_26 = arith.constant dense<0.000000e+00> : vector<104xf32>
    %39 = vector.multi_reduction <add>, %38, %cst_26 [1] : vector<104x128xf32> to vector<104xf32>
    %40 = vector.shape_cast %39 : vector<104xf32> to vector<104x1xf32>
    %41 = tpu.reciprocal %40 {approx = true} : vector<104x1xf32> -> vector<104x1xf32>
    %42 = vector.broadcast %41 : vector<104x1xf32> to vector<104x128xf32>
    %43 = arith.mulf %38, %42 : vector<104x128xf32>
    %c0_27 = arith.constant 0 : index
    %c0_28 = arith.constant 0 : index
    %44 = vector.load %arg11[%c0_27, %c0_28] : memref<128x32xf32, #tpu.memory_space<vmem>>, vector<128x32xf32>
    %cst_29 = arith.constant dense<0.000000e+00> : vector<104x32xf32>
    %45 = tpu.matmul %43, %44, %cst_29 {dimension_numbers = #tpu.dot_dimension_numbers<[1], [0], [0], [1], [0, 0, 1, 1], [], []>} : vector<104x128xf32>, vector<128x32xf32>, vector<104x32xf32> -> vector<104x32xf32>
    %c0_30 = arith.constant 0 : index
    %c0_31 = arith.constant 0 : index
    %46 = vector.load %arg12[%c0_30, %c0_31] : memref<1x32xf32, #tpu.memory_space<vmem>>, vector<1x32xf32>
    %47 = vector.broadcast %46 : vector<1x32xf32> to vector<104x32xf32>
    %48 = arith.addf %45, %47 : vector<104x32xf32>
    %cst_32 = arith.constant 0.000000e+00 : f32
    %49 = vector.broadcast %cst_32 : f32 to vector<104x32xf32>
    %50 = arith.maximumf %48, %49 : vector<104x32xf32>
    %51 = arith.truncf %50 : vector<104x32xf32> to vector<104x32xbf16>
    %c0_33 = arith.constant 0 : index
    %c0_34 = arith.constant 0 : index
    %52 = vector.load %arg13[%c0_33, %c0_34] : memref<32x128xbf16, #tpu.memory_space<vmem>>, vector<32x128xbf16>
    %cst_35 = arith.constant dense<0.000000e+00> : vector<104x128xf32>
    %53 = tpu.matmul %51, %52, %cst_35 {dimension_numbers = #tpu.dot_dimension_numbers<[1], [0], [0], [1], [0, 0, 1, 1], [], []>} : vector<104x32xbf16>, vector<32x128xbf16>, vector<104x128xf32> -> vector<104x128xf32>
    %c0_36 = arith.constant 0 : index
    %c0_37 = arith.constant 0 : index
    %54 = vector.load %arg14[%c0_36, %c0_37] : memref<1x128xf32, #tpu.memory_space<vmem>>, vector<1x128xf32>
    %55 = vector.broadcast %54 : vector<1x128xf32> to vector<104x128xf32>
    %56 = arith.addf %53, %55 : vector<104x128xf32>
    %c0_38 = arith.constant 0 : index
    %c0_39 = arith.constant 0 : index
    %57 = vector.load %arg15[%c0_38, %c0_39] : memref<104x256xf32, #tpu.memory_space<vmem>>, vector<104x128xf32>
    tpu.vector_store %arg15[%c0_38, %c0_39], %20 {strides = array<i32>} : memref<104x256xf32, #tpu.memory_space<vmem>>, vector<104x128xf32>,
    %c0_40 = arith.constant 0 : index
    %c128 = arith.constant 128 : index
    %58 = vector.load %arg15[%c0_40, %c128] : memref<104x256xf32, #tpu.memory_space<vmem>>, vector<104x128xf32>
    tpu.vector_store %arg15[%c0_40, %c128], %43 {strides = array<i32>} : memref<104x256xf32, #tpu.memory_space<vmem>>, vector<104x128xf32>,
    %c0_41 = arith.constant 0 : index
    %c0_42 = arith.constant 0 : index
    %59 = vector.load %arg16[%c0_41, %c0_42] : memref<104x128xf32, #tpu.memory_space<vmem>>, vector<104x128xf32>
    tpu.vector_store %arg16[%c0_41, %c0_42], %56 {strides = array<i32>} : memref<104x128xf32, #tpu.memory_space<vmem>>, vector<104x128xf32>,
    return
  }
  func.func @transform_0(%arg0: i32) -> (i32, i32) {
    %c0_i32 = arith.constant 0 : i32
    %c0_i32_0 = arith.constant 0 : i32
    return %arg0, %c0_i32 : i32, i32
  }
  func.func @transform_1(%arg0: i32) -> (i32, i32) {
    %c0_i32 = arith.constant 0 : i32
    %c0_i32_0 = arith.constant 0 : i32
    return %arg0, %c0_i32 : i32, i32
  }
  func.func @transform_2(%arg0: i32) -> (i32, i32) {
    %c0_i32 = arith.constant 0 : i32
    %c0_i32_0 = arith.constant 0 : i32
    %c0_i32_1 = arith.constant 0 : i32
    return %c0_i32, %c0_i32_0 : i32, i32
  }
  func.func @transform_3(%arg0: i32) -> (i32, i32) {
    %c0_i32 = arith.constant 0 : i32
    %c0_i32_0 = arith.constant 0 : i32
    %c0_i32_1 = arith.constant 0 : i32
    return %c0_i32, %c0_i32_0 : i32, i32
  }
  func.func @transform_4(%arg0: i32) -> (i32, i32) {
    %c0_i32 = arith.constant 0 : i32
    %c0_i32_0 = arith.constant 0 : i32
    %c0_i32_1 = arith.constant 0 : i32
    return %c0_i32, %c0_i32_0 : i32, i32
  }
  func.func @transform_5(%arg0: i32) -> (i32, i32) {
    %c0_i32 = arith.constant 0 : i32
    %c0_i32_0 = arith.constant 0 : i32
    %c0_i32_1 = arith.constant 0 : i32
    return %c0_i32, %c0_i32_0 : i32, i32
  }
  func.func @transform_6(%arg0: i32) -> (i32, i32) {
    %c0_i32 = arith.constant 0 : i32
    %c0_i32_0 = arith.constant 0 : i32
    %c0_i32_1 = arith.constant 0 : i32
    return %c0_i32, %c0_i32_0 : i32, i32
  }
  func.func @transform_7(%arg0: i32) -> (i32, i32) {
    %c0_i32 = arith.constant 0 : i32
    %c0_i32_0 = arith.constant 0 : i32
    %c0_i32_1 = arith.constant 0 : i32
    return %c0_i32, %c0_i32_0 : i32, i32
  }
  func.func @transform_8(%arg0: i32) -> (i32, i32) {
    %c0_i32 = arith.constant 0 : i32
    %c0_i32_0 = arith.constant 0 : i32
    %c0_i32_1 = arith.constant 0 : i32
    return %c0_i32, %c0_i32_0 : i32, i32
  }
  func.func @transform_9(%arg0: i32) -> (i32, i32) {
    %c0_i32 = arith.constant 0 : i32
    %c0_i32_0 = arith.constant 0 : i32
    %c0_i32_1 = arith.constant 0 : i32
    return %c0_i32, %c0_i32_0 : i32, i32
  }
  func.func @transform_10(%arg0: i32) -> (i32, i32) {
    %c0_i32 = arith.constant 0 : i32
    %c0_i32_0 = arith.constant 0 : i32
    %c0_i32_1 = arith.constant 0 : i32
    return %c0_i32, %c0_i32_0 : i32, i32
  }
  func.func @transform_11(%arg0: i32) -> (i32, i32) {
    %c0_i32 = arith.constant 0 : i32
    %c0_i32_0 = arith.constant 0 : i32
    %c0_i32_1 = arith.constant 0 : i32
    return %c0_i32, %c0_i32_0 : i32, i32
  }
  func.func @transform_12(%arg0: i32) -> (i32, i32) {
    %c0_i32 = arith.constant 0 : i32
    %c0_i32_0 = arith.constant 0 : i32
    %c0_i32_1 = arith.constant 0 : i32
    return %c0_i32, %c0_i32_0 : i32, i32
  }
  func.func @transform_13(%arg0: i32) -> (i32, i32) {
    %c0_i32 = arith.constant 0 : i32
    %c0_i32_0 = arith.constant 0 : i32
    %c0_i32_1 = arith.constant 0 : i32
    return %c0_i32, %c0_i32_0 : i32, i32
  }
  func.func @transform_14(%arg0: i32) -> (i32, i32) {
    %c0_i32 = arith.constant 0 : i32
    %c0_i32_0 = arith.constant 0 : i32
    return %arg0, %c0_i32 : i32, i32
  }
  func.func @transform_15(%arg0: i32) -> (i32, i32) {
    %c0_i32 = arith.constant 0 : i32
    %c0_i32_0 = arith.constant 0 : i32
    return %arg0, %c0_i32 : i32, i32
  }
}

</mosaic_0001>

<bundles_post_ra>
// kernel: vae_forward.1
= control target key start
LH: loop header
LB: loop body
LE: loop exit
PB: predicated region body
PF: predicated region fallthrough
CT: control target
= control target key end

     0   :  { %s1827_s18 = smov 0   ;;  %s2312_s0 = inlined_call_operand.vmem [shape: f32[208,32], index: 0, kind: input, shape index: {}]   ;;  %s2313_s1 = inlined_call_operand.vmem [shape: f32[208,8], index: 1, kind: input, shape index: {}]   ;;  %s2314_s2 = inlined_call_operand.vmem [shape: bf16[32,64], index: 2, kind: input, shape index: {}]   ;;  %s2315_s3 = inlined_call_operand.vmem [shape: f32[1,64], index: 3, kind: input, shape index: {}]   ;;  %s2316_s4 = inlined_call_operand.vmem [shape: f32[64,32], index: 4, kind: input, shape index: {}]   ;;  %s2317_s5 = inlined_call_operand.vmem [shape: f32[1,32], index: 5, kind: input, shape index: {}]   ;;  %s2318_s6 = inlined_call_operand.vmem [shape: f32[32,128], index: 6, kind: input, shape index: {}]   ;;  %s2319_s7 = inlined_call_operand.vmem [shape: f32[1,128], index: 7, kind: input, shape index: {}]   ;;  %s2320_s8 = inlined_call_operand.vmem [shape: f32[8,128], index: 8, kind: input, shape index: {}]   ;;  %s2321_s9 = inlined_call_operand.vmem [shape: f32[1,128], index: 9, kind: input, shape index: {}]   ;;  %s2322_s10 = inlined_call_operand.vmem [shape: f32[128,32], index: 10, kind: input, shape index: {}]   ;;  %s2323_s11 = inlined_call_operand.vmem [shape: f32[1,32], index: 11, kind: input, shape index: {}]   ;;  %s2324_s12 = inlined_call_operand.vmem [shape: bf16[32,128], index: 12, kind: input, shape index: {}]   ;;  %s2325_s13 = inlined_call_operand.vmem [shape: f32[1,128], index: 13, kind: input, shape index: {}]   ;;  %s2326_s14 = inlined_call_operand.vmem [shape: f32[208,256], index: 14, kind: output, shape index: {0}]   ;;  %s2327_s15 = inlined_call_operand.vmem [shape: f32[208,128], index: 15, kind: output, shape index: {1}]  }
   0x1 LB: > { %s1550_s19 = sadd.s32 4294967295, %s1744_s18   ;;  %p1554_p0 = scmp.ge.s32.totalorder %s1744_s18, 1  ;;  %s1744_s18 = sphi %s1827_s18, %s26_s18  }
   0x2   : > { %p452_p1 = scmp.lt.s32.totalorder %s1744_s18, 3 }
   0x4   : > { %p453_p2 = pnand %p1554_p0, %p452_p1 }
   0x5   : > { %s511_s22 = smul.u32 (!%p453_p2), 13, %s1550_s19 }
   0x6   : > { %456 = sbr.rel (%p453_p2) target bundleno = 1370 (0x55a), region = 76 }
   0x7   : > { %p512_p3 = scmp.lt.s32.totalorder (!%p453_p2), %s511_s22, 25 }
   0xb   : > { %v1633_v0 = vld [vmem:[%s2314_s2 + $0x8] sm:$0xff]  ;;  %v1632_v1 = vld [vmem:[%s2314_s2] sm:$0xff]  ;;  %s2329_s22 = smov (!%p512_p3, %s511_s22), 25  ;;  %vm577_vm0 = vcmask 261120   ;;  %v662_v17 = vld [vmem:[%s2316_s4 + $0x38] sm:$0xff]  ;;  %vm667_vm1 = vcmask 523264  }
   0xc   : > { %605 = vmatpush.bf16.msra.mxu0 %v1633_v0  ;;  %s1844_s25 = sshll.u32 %s2329_s22, 3  ;;  %v661_v18 = vld [vmem:[%s2316_s4 + $0x30] sm:$0xff]  ;;  %715 = vmatpush.msra.mxu1 %v662_v17  ;;  %v660_v19 = vld [vmem:[%s2316_s4 + $0x28] sm:$0xff]  ;;  %v659_v20 = vld [vmem:[%s2316_s4 + $0x20] sm:$0xff]  ;;  %s1631_s20 = sshll.u32 %s2329_s22, 4  ;;  %vm1014_vm2 = vcmask 64512  }
   0xd   : > { %s1850_s28 = scalar_lea.vmem %s2312_s0, %s1844_s25  ;;  %v658_v21 = vld [vmem:[%s2316_s4 + $0x18] sm:$0xff]  ;;  %v657_v27 = vld [vmem:[%s2316_s4 + $0x10] sm:$0xff]  ;;  %v656_v28 = vld [vmem:[%s2316_s4 + $0x8] sm:$0xff]  ;;  %s1964_s26 = scalar_lea.vmem %s2326_s14, %s1631_s20 }
   0xe   : > { %v537_v2 = vld [vmem:[%s1850_s28] sm:$0xff]  ;;  %v538_v3 = vld [vmem:[%s1850_s28 + $0x8] sm:$0xff]  ;;  %v539_v5 = vld [vmem:[%s1850_s28 + $0x10] sm:$0xff]  ;;  %716 = vmatpush.msra.mxu1 %v661_v18  ;;  %s1746_s22 = smov 120   ;;  %s2064_s17 = scalar_lea.vmem %s2313_s1, %s1844_s25 }
   0xf   : > { %v550_v4 = vpack.c.bf16 %v538_v3, %v537_v2  ;;  %v540_v6 = vld [vmem:[%s1850_s28 + $0x18] sm:$0xff]  ;;  %v541_v8 = vld [vmem:[%s1850_s28 + $0x20] sm:$0xff]  ;;  %v542_v9 = vld [vmem:[%s1850_s28 + $0x28] sm:$0xff]  ;;  %s2288_s27 = scalar_lea.vmem %s2327_s15, %s1844_s25 }
  0x10   : > { %606 = vmatpush.bf16.msra.mxu0 %v1632_v1  ;;  %v551_v7 = vpack.c.bf16 %v540_v6, %v539_v5  ;;  %v552_v10 = vpack.c.bf16 %v542_v9, %v541_v8  ;;  %v543_v11 = vld [vmem:[%s1850_s28 + $0x30] sm:$0xff]  ;;  %v544_v12 = vld [vmem:[%s1850_s28 + $0x38] sm:$0xff]  ;;  %v545_v14 = vld [vmem:[%s1850_s28 + $0x40] sm:$0xff]  ;;  %717 = vmatpush.msra.mxu1 %v660_v19 }
  0x11   : > { %v553_v13 = vpack.c.bf16 %v544_v12, %v543_v11  ;;  %v546_v15 = vld [vmem:[%s1850_s28 + $0x48] sm:$0xff]  ;;  %v547_v22 = vld [vmem:[%s1850_s28 + $0x50] sm:$0xff]  ;;  %v548_v23 = vld [vmem:[%s1850_s28 + $0x58] sm:$0xff] }
  0x12   : > { %v554_v16 = vpack.c.bf16 %v546_v15, %v545_v14  ;;  %718 = vmatpush.msra.mxu1 %v659_v20  ;;  %v555_v24 = vpack.c.bf16 %v548_v23, %v547_v22  ;;  %v549_v25 = vld [vmem:[%s1850_s28 + $0x60] sm:$0xff]  ;;  %v779_v30 = vld [vmem:[%s2318_s6 + $0x18] sm:$0xff]  ;;  %v778_v41 = vld [vmem:[%s2318_s6 + $0x10] sm:$0xff] }
  0x13   : > { %1568 = vmatmul.msk.bf16.vlgmr.msra.gmra.mxu0 %vm577_vm0, %v550_v4  ;;  %v556_v26 = vpack.c.bf16 %v549_v25, %v549_v25  ;;  %v655_v29 = vld [vmem:[%s2316_s4] sm:$0xff]  ;;  %1637 = vmatpush.msra.mxu2 %v779_v30  ;;  %v777_v51 = vld [vmem:[%s2318_s6 + $0x8] sm:$0xff] }
  0x14   : > { %719 = vmatpush.msra.mxu1 %v658_v21  ;;  %835 = vmatpush.msrb.mxu0 %v779_v30  ;;  %v1902_v31 = vld [vmem:[%s2315_s3] ss:$0 sm:$0xff] }
  0x15   : > { %1639 = vmatpush.msra.mxu2 %v778_v41  ;;  %v776_v61 = vld [vmem:[%s2318_s6] sm:$0xff] }
  0x16   : > { %720 = vmatpush.msra.mxu1 %v657_v27  ;;  %836 = vmatpush.msrb.mxu0 %v778_v41  ;;  %v1655_v11 = vld [vmem:[%s2317_s5] ss:$0 sm:$0xff] }
  0x17   : > { %1641 = vmatpush.msra.mxu2 %v777_v51 }
  0x18   : > { %721 = vmatpush.msra.mxu1 %v656_v28  ;;  %837 = vmatpush.msrb.mxu0 %v777_v51 }
  0x19   : > { %1643 = vmatpush.msra.mxu2 %v776_v61 }
  0x1a   : > { %722 = vmatpush.msra.mxu1 %v655_v29  ;;  %838 = vmatpush.msrb.mxu0 %v776_v61 }
  0x1c   : > { %1636 = vmatpush.msrb.mxu1 %v779_v30 }
  0x1e   : > { %1638 = vmatpush.msrb.mxu1 %v778_v41 }
  0x20   : > { %1640 = vmatpush.msrb.mxu1 %v777_v51  ;;  %v1959_v51 = vld [vmem:[%s2319_s7] ss:$0 sm:$0xff] }
  0x22   : > { %1642 = vmatpush.msrb.mxu1 %v776_v61 }
  0x23   : > { %1569 = vmatmul.msk.bf16.gmra.mxu0 %vm577_vm0, %v551_v7 }
  0x33   : > { %1570 = vmatmul.msk.bf16.gmra.mxu0 %vm577_vm0, %v552_v10 }
  0x43   : > { %1571 = vmatmul.msk.bf16.gmra.mxu0 %vm577_vm0, %v553_v13 }
  0x53   : > { %1572 = vmatmul.msk.bf16.gmra.mxu0 %vm577_vm0, %v554_v16 }
  0x63   : > { %1573 = vmatmul.msk.bf16.gmra.mxu0 %vm577_vm0, %v555_v24 }
  0x73   : > { %1574 = vmatmul.msk.bf16.gmra.mxu0 %vm577_vm0, %v556_v26 }
  0x90   : > { %v608_v32 = vpop.f32.mrf.mxu0 }
  0x91   : > { %v609_v33 = vadd.f32 %v1902_v31, %v608_v32 }
  0x93   : > { %v642_v34 = vmax.f32 %v609_v33, 0.0 }
  0x95   : > { %1575 = vmatmul.msk.f32.vlgmr.msra.gmra.mxu1 %vm667_vm1, %v642_v34 }
  0x98   : > { %v610_v35 = vpop.f32.mrf.mxu0 }
  0x99   : > { %v611_v36 = vadd.f32 %v1902_v31, %v610_v35 }
  0x9b   : > { %v643_v37 = vmax.f32 %v611_v36, 0.0 }
  0x9d   : > { %1576 = vmatmul.msk.f32.gmra.mxu1 %vm667_vm1, %v643_v37 }
  0xa0   : > { %v613_v38 = vpop.f32.mrf.mxu0 }
  0xa1   : > { %v614_v39 = vadd.f32 %v1902_v31, %v613_v38 }
  0xa3   : > { %v644_v40 = vmax.f32 %v614_v39, 0.0 }
  0xa5   : > { %1577 = vmatmul.msk.f32.gmra.mxu1 %vm667_vm1, %v644_v40 }
  0xa8   : > { %v615_v42 = vpop.f32.mrf.mxu0 }
  0xa9   : > { %v616_v43 = vadd.f32 %v1902_v31, %v615_v42 }
  0xab   : > { %v645_v44 = vmax.f32 %v616_v43, 0.0 }
  0xad   : > { %1578 = vmatmul.msk.f32.gmra.mxu1 %vm667_vm1, %v645_v44 }
  0xb0   : > { %v618_v45 = vpop.f32.mrf.mxu0 }
  0xb1   : > { %v619_v46 = vadd.f32 %v1902_v31, %v618_v45 }
  0xb3   : > { %v646_v47 = vmax.f32 %v619_v46, 0.0 }
  0xb5   : > { %1579 = vmatmul.msk.f32.gmra.mxu1 %vm667_vm1, %v646_v47 }
  0xb8   : > { %v620_v48 = vpop.f32.mrf.mxu0 }
  0xb9   : > { %v621_v49 = vadd.f32 %v1902_v31, %v620_v48 }
  0xbb   : > { %v647_v50 = vmax.f32 %v621_v49, 0.0 }
  0xbd   : > { %1580 = vmatmul.msk.f32.gmra.mxu1 %vm667_vm1, %v647_v50 }
  0xc0   : > { %v623_v52 = vpop.f32.mrf.mxu0 }
  0xc1   : > { %v624_v53 = vadd.f32 %v1902_v31, %v623_v52 }
  0xc3   : > { %v648_v54 = vmax.f32 %v624_v53, 0.0 }
  0xc5   : > { %1581 = vmatmul.msk.f32.gmra.mxu1 %vm667_vm1, %v648_v54 }
  0xc8   : > { %v625_v55 = vpop.f32.mrf.mxu0 }
  0xc9   : > { %v626_v56 = vadd.f32 %v1902_v31, %v625_v55 }
  0xcb   : > { %v649_v57 = vmax.f32 %v626_v56, 0.0 }
  0xcd   : > { %1582 = vmatmul.msk.f32.gmra.mxu1 %vm667_vm1, %v649_v57 }
  0xd0   : > { %v628_v58 = vpop.f32.mrf.mxu0 }
  0xd1   : > { %v629_v59 = vadd.f32 %v1902_v31, %v628_v58 }
  0xd3   : > { %v650_v60 = vmax.f32 %v629_v59, 0.0 }
  0xd5   : > { %1583 = vmatmul.msk.f32.gmra.mxu1 %vm667_vm1, %v650_v60 }
  0xd8   : > { %v630_v62 = vpop.f32.mrf.mxu0 }
  0xd9   : > { %v631_v63 = vadd.f32 %v1902_v31, %v630_v62 }
  0xdb   : > { %v651_v0 = vmax.f32 %v631_v63, 0.0 }
  0xdd   : > { %1584 = vmatmul.msk.f32.gmra.mxu1 %vm667_vm1, %v651_v0 }
  0xe0   : > { %v633_v1 = vpop.f32.mrf.mxu0 }
  0xe1   : > { %v634_v2 = vadd.f32 %v1902_v31, %v633_v1 }
  0xe3   : > { %v652_v3 = vmax.f32 %v634_v2, 0.0 }
  0xe5   : > { %1585 = vmatmul.msk.f32.gmra.mxu1 %vm667_vm1, %v652_v3 }
  0xe8   : > { %v635_v4 = vpop.f32.mrf.mxu0 }
  0xe9   : > { %v636_v5 = vadd.f32 %v1902_v31, %v635_v4 }
  0xeb   : > { %v653_v6 = vmax.f32 %v636_v5, 0.0 }
  0xed   : > { %1586 = vmatmul.msk.f32.gmra.mxu1 %vm667_vm1, %v653_v6 }
  0xf0   : > { %v638_v7 = vpop.f32.mrf.mxu0 }
  0xf1   : > { %v639_v8 = vadd.f32 %v1902_v31, %v638_v7 }
  0xf3   : > { %v654_v9 = vmax.f32 %v639_v8, 0.0 }
  0xf5   : > { %1587 = vmatmul.msk.f32.gmra.mxu1 %vm667_vm1, %v654_v9 }
  0xf8   : > { %v640_v10 = vpop.f32.mrf.mxu0 }
 0x112   : > { %v724_v12 = vpop.f32.mrf.mxu1 }
 0x113   : > { %v725_v13 = vadd.f32 %v1655_v11, %v724_v12 }
 0x115   : > { %v763_v14 = vmax.f32 %v725_v13, 0.0 }
 0x117   : > { %1588 = vmatmul.msk.f32.vlgmr.msrb.gmra.mxu0 %vm577_vm0, %v763_v14 }
 0x11a   : > { %v727_v15 = vpop.f32.mrf.mxu1 }
 0x11b   : > { %v728_v16 = vadd.f32 %v1655_v11, %v727_v15 }
 0x11d   : > { %v764_v17 = vmax.f32 %v728_v16, 0.0 }
 0x11f   : > { %1589 = vmatmul.msk.f32.gmra.mxu0 %vm577_vm0, %v764_v17 }
 0x122   : > { %v730_v18 = vpop.f32.mrf.mxu1 }
 0x123   : > { %v731_v19 = vadd.f32 %v1655_v11, %v730_v18 }
 0x125   : > { %v765_v20 = vmax.f32 %v731_v19, 0.0 }
 0x127   : > { %1590 = vmatmul.msk.f32.gmra.mxu0 %vm577_vm0, %v765_v20 }
 0x12a   : > { %v733_v21 = vpop.f32.mrf.mxu1 }
 0x12b   : > { %v734_v22 = vadd.f32 %v1655_v11, %v733_v21 }
 0x12d   : > { %v766_v23 = vmax.f32 %v734_v22, 0.0 }
 0x12f   : > { %1591 = vmatmul.msk.f32.gmra.mxu0 %vm577_vm0, %v766_v23 }
 0x132   : > { %v736_v24 = vpop.f32.mrf.mxu1 }
 0x133   : > { %v737_v25 = vadd.f32 %v1655_v11, %v736_v24 }
 0x135   : > { %v767_v26 = vmax.f32 %v737_v25, 0.0 }
 0x137   : > { %1592 = vmatmul.msk.f32.gmra.mxu0 %vm577_vm0, %v767_v26 }
 0x13a   : > { %v739_v27 = vpop.f32.mrf.mxu1 }
 0x13b   : > { %v740_v28 = vadd.f32 %v1655_v11, %v739_v27 }
 0x13d   : > { %v768_v29 = vmax.f32 %v740_v28, 0.0 }
 0x13f   : > { %1593 = vmatmul.msk.f32.gmra.mxu0 %vm577_vm0, %v768_v29 }
 0x142   : > { %v742_v30 = vpop.f32.mrf.mxu1 }
 0x143   : > { %v743_v31 = vadd.f32 %v1655_v11, %v742_v30 }
 0x145   : > { %v769_v32 = vmax.f32 %v743_v31, 0.0 }
 0x147   : > { %1594 = vmatmul.msk.f32.vlgmr.msrb.gmra.mxu1 %vm577_vm0, %v769_v32 }
 0x14a   : > { %v745_v33 = vpop.f32.mrf.mxu1 }
 0x14b   : > { %v746_v34 = vadd.f32 %v1655_v11, %v745_v33 }
 0x14d   : > { %v770_v35 = vmax.f32 %v746_v34, 0.0 }
 0x14f   : > { %1595 = vmatmul.msk.f32.vlgmr.msra.gmra.mxu2 %vm577_vm0, %v770_v35 }
 0x152   : > { %v748_v36 = vpop.f32.mrf.mxu1 }
 0x153   : > { %v749_v37 = vadd.f32 %v1655_v11, %v748_v36 }
 0x155   : > { %v771_v38 = vmax.f32 %v749_v37, 0.0  ;;  %v1009_v37 = vld [vmem:[%s2320_s8] sm:$0xff] }
 0x156   : > { %1069 = vmatpush.msra.mxu1 %v1009_v37  ;;  %1644 = vmatpush.msra.mxu3 %v1009_v37 }
 0x157   : > { %1596 = vmatmul.msk.f32.gmra.mxu2 %vm577_vm0, %v771_v38 }
 0x15a   : > { %v751_v39 = vpop.f32.mrf.mxu1 }
 0x15b   : > { %v752_v40 = vadd.f32 %v1655_v11, %v751_v39 }
 0x15d   : > { %v772_v41 = vmax.f32 %v752_v40, 0.0 }
 0x15f   : > { %1597 = vmatmul.msk.f32.gmra.mxu2 %vm577_vm0, %v772_v41 }
 0x162   : > { %v754_v42 = vpop.f32.mrf.mxu1 }
 0x163   : > { %v755_v43 = vadd.f32 %v1655_v11, %v754_v42 }
 0x165   : > { %v773_v44 = vmax.f32 %v755_v43, 0.0 }
 0x167   : > { %1598 = vmatmul.msk.f32.gmra.mxu2 %vm577_vm0, %v773_v44 }
 0x16a   : > { %v757_v45 = vpop.f32.mrf.mxu1 }
 0x16b   : > { %v758_v46 = vadd.f32 %v1655_v11, %v757_v45 }
 0x16d   : > { %v774_v47 = vmax.f32 %v758_v46, 0.0 }
 0x16f   : > { %1599 = vmatmul.msk.f32.gmra.mxu2 %vm577_vm0, %v774_v47 }
 0x172   : > { %v760_v48 = vpop.f32.mrf.mxu1 }
 0x173   : > { %v761_v49 = vadd.f32 %v1655_v11, %v760_v48 }
 0x175   : > { %v775_v50 = vmax.f32 %v761_v49, 0.0 }
 0x177   : > { %1600 = vmatmul.msk.f32.gmra.mxu2 %vm577_vm0, %v775_v50 }
 0x194   : > { %v840_v52 = vpop.f32.mrf.mxu0 }
 0x195   : > { %v1967_v53 = vadd.f32 %v1959_v51, %v840_v52 }
 0x197   : > { %v892_v54 = vmul.f32 0.5, %v1967_v53  ;;  %1407 = vst [vmem:[%s1964_s26] sm:$0xff] %v1967_v53 }
 0x199   : > { %v905_v55 = vmul.f32 1.442695, %v892_v54 }
 0x19b   : > { %1660 = vpow2.f32 %v905_v55 }
 0x19c   : > { %v843_v56 = vpop.f32.mrf.mxu0 }
 0x19d   : > { %v1973_v57 = vadd.f32 %v1959_v51, %v843_v56 }
 0x19f   : > { %v893_v58 = vmul.f32 0.5, %v1973_v57  ;;  %1408 = vst [vmem:[%s1964_s26 + $0x10] sm:$0xff] %v1973_v57 }
 0x1a1   : > { %v1661_v59 = vpop.eup %1660  ;;  %v907_v60 = vmul.f32 1.442695, %v893_v58 }
 0x1a2   : > { %944 = vrot.lane.b32.xlu0 %v1661_v59, %s1746_s22 }
 0x1a3   : > { %1662 = vpow2.f32 %v907_v60  ;;  %v880_v60 = vld [vmem:[%s2064_s17 + $0x8] sm:$0xff] }
 0x1a4   : > { %v846_v61 = vpop.f32.mrf.mxu0 }
 0x1a5   : > { %v1980_v62 = vadd.f32 %v1959_v51, %v846_v61 }
 0x1a7   : > { %v894_v63 = vmul.f32 0.5, %v1980_v62  ;;  %1409 = vst [vmem:[%s1964_s26 + $0x20] sm:$0xff] %v1980_v62 }
 0x1a9   : > { %v1663_v0 = vpop.eup %1662  ;;  %v909_v1 = vmul.f32 1.442695, %v894_v63 }
 0x1aa   : > { %946 = vrot.lane.b32.xlu0 %v1663_v0, %s1746_s22 }
 0x1ab   : > { %1664 = vpow2.f32 %v909_v1 }
 0x1ac   : > { %v849_v2 = vpop.f32.mrf.mxu0 }
 0x1ad   : > { %v1987_v3 = vadd.f32 %v1959_v51, %v849_v2  ;;  %v884_v2 = vld [vmem:[%s2064_s17 + $0x28] sm:$0xff] }
 0x1af   : > { %v895_v4 = vmul.f32 0.5, %v1987_v3  ;;  %1410 = vst [vmem:[%s1964_s26 + $0x30] sm:$0xff] %v1987_v3 }
 0x1b1   : > { %v1665_v5 = vpop.eup %1664  ;;  %v911_v6 = vmul.f32 1.442695, %v895_v4  ;;  %v881_v4 = vld [vmem:[%s2064_s17 + $0x10] sm:$0xff] }
 0x1b2   : > { %948 = vrot.lane.b32.xlu1 %v1665_v5, %s1746_s22 }
 0x1b3   : > { %1666 = vpow2.f32 %v911_v6 }
 0x1b4   : > { %v852_v7 = vpop.f32.mrf.mxu0 }
 0x1b5   : > { %v1994_v8 = vadd.f32 %v1959_v51, %v852_v7 }
 0x1b7   : > { %v896_v9 = vmul.f32 0.5, %v1994_v8  ;;  %1411 = vst [vmem:[%s1964_s26 + $0x40] sm:$0xff] %v1994_v8 }
 0x1b9   : > { %v1667_v10 = vpop.eup %1666  ;;  %v913_v11 = vmul.f32 1.442695, %v896_v9 }
 0x1ba   : > { %950 = vrot.lane.b32.xlu1 %v1667_v10, %s1746_s22 }
 0x1bb   : > { %1668 = vpow2.f32 %v913_v11 }
 0x1bc   : > { %v855_v12 = vpop.f32.mrf.mxu0 }
 0x1bd   : > { %v2001_v13 = vadd.f32 %v1959_v51, %v855_v12 }
 0x1bf   : > { %v897_v14 = vmul.f32 0.5, %v2001_v13  ;;  %1412 = vst [vmem:[%s1964_s26 + $0x50] sm:$0xff] %v2001_v13 }
 0x1c1   : > { %v1669_v15 = vpop.eup %1668  ;;  %v915_v16 = vmul.f32 1.442695, %v897_v14 }
 0x1c2   : > { %952 = vrot.lane.b32.xlu2 %v1669_v15, %s1746_s22  ;;  %v883_v15 = vld [vmem:[%s2064_s17 + $0x20] sm:$0xff] }
 0x1c3   : > { %1670 = vpow2.f32 %v915_v16 }
 0x1c4   : > { %v858_v17 = vpop.f32.mrf.mxu1 }
 0x1c5   : > { %v2008_v18 = vadd.f32 %v1959_v51, %v858_v17 }
 0x1c7   : > { %v898_v19 = vmul.f32 0.5, %v2008_v18  ;;  %1413 = vst [vmem:[%s1964_s26 + $0x60] sm:$0xff] %v2008_v18 }
 0x1c9   : > { %v1671_v20 = vpop.eup %1670  ;;  %v917_v21 = vmul.f32 1.442695, %v898_v19 }
 0x1ca   : > { %954 = vrot.lane.b32.xlu2 %v1671_v20, %s1746_s22 }
 0x1cb   : > { %1672 = vpow2.f32 %v917_v21  ;;  %v886_v21 = vld [vmem:[%s2064_s17 + $0x38] sm:$0xff] }
 0x1d1   : > { %v1673_v22 = vpop.eup %1672 }
 0x1d2   : > { %v861_v23 = vpop.f32.mrf.mxu2  ;;  %956 = vrot.lane.b32.xlu0 %v1673_v22, %s1746_s22 }
 0x1d3   : > { %v2016_v24 = vadd.f32 %v1959_v51, %v861_v23 }
 0x1d5   : > { %v899_v25 = vmul.f32 0.5, %v2016_v24  ;;  %1414 = vst [vmem:[%s1964_s26 + $0x70] sm:$0xff] %v2016_v24 }
 0x1d7   : > { %v919_v26 = vmul.f32 1.442695, %v899_v25  ;;  %v887_v25 = vld [vmem:[%s2064_s17 + $0x40] sm:$0xff] }
 0x1d9   : > { %1674 = vpow2.f32 %v919_v26 }
 0x1da   : > { %v864_v27 = vpop.f32.mrf.mxu2 }
 0x1db   : > { %v2022_v28 = vadd.f32 %v1959_v51, %v864_v27 }
 0x1dd   : > { %v900_v29 = vmul.f32 0.5, %v2022_v28  ;;  %1415 = vst [vmem:[%s1964_s26 + $0x80] sm:$0xff] %v2022_v28 }
 0x1df   : > { %v1675_v30 = vpop.eup %1674  ;;  %v921_v31 = vmul.f32 1.442695, %v900_v29 }
 0x1e0   : > { %958 = vrot.lane.b32.xlu1 %v1675_v30, %s1746_s22 }
 0x1e1   : > { %1676 = vpow2.f32 %v921_v31 }
 0x1e2   : > { %v867_v32 = vpop.f32.mrf.mxu2 }
 0x1e3   : > { %v2029_v33 = vadd.f32 %v1959_v51, %v867_v32  ;;  %v889_v32 = vld [vmem:[%s2064_s17 + $0x50] sm:$0xff] }
 0x1e5   : > { %v901_v34 = vmul.f32 0.5, %v2029_v33  ;;  %1416 = vst [vmem:[%s1964_s26 + $0x90] sm:$0xff] %v2029_v33 }
 0x1e7   : > { %v1677_v35 = vpop.eup %1676  ;;  %v923_v36 = vmul.f32 1.442695, %v901_v34 }
 0x1e8   : > { %960 = vrot.lane.b32.xlu2 %v1677_v35, %s1746_s22 }
 0x1e9   : > { %1678 = vpow2.f32 %v923_v36  ;;  %v890_v36 = vld [vmem:[%s2064_s17 + $0x58] sm:$0xff] }
 0x1ea   : > { %v870_v38 = vpop.f32.mrf.mxu2 }
 0x1eb   : > { %v2039_v39 = vadd.f32 %v1959_v51, %v870_v38 }
 0x1ed   : > { %v902_v40 = vmul.f32 0.5, %v2039_v39  ;;  %1417 = vst [vmem:[%s1964_s26 + $0xa0] sm:$0xff] %v2039_v39 }
 0x1ef   : > { %v1679_v41 = vpop.eup %1678  ;;  %v925_v42 = vmul.f32 1.442695, %v902_v40  ;;  %v891_v40 = vld [vmem:[%s2064_s17 + $0x60] sm:$0xff] }
 0x1f0   : > { %962 = vrot.lane.b32.xlu0 %v1679_v41, %s1746_s22 }
 0x1f1   : > { %1680 = vpow2.f32 %v925_v42 }
 0x1f2   : > { %v873_v43 = vpop.f32.mrf.mxu2 }
 0x1f3   : > { %v2046_v44 = vadd.f32 %v1959_v51, %v873_v43 }
 0x1f5   : > { %v903_v45 = vmul.f32 0.5, %v2046_v44  ;;  %1418 = vst [vmem:[%s1964_s26 + $0xb0] sm:$0xff] %v2046_v44 }
 0x1f7   : > { %v1681_v46 = vpop.eup %1680  ;;  %v927_v47 = vmul.f32 1.442695, %v903_v45 }
 0x1f8   : > { %964 = vrot.lane.b32.xlu1 %v1681_v46, %s1746_s22 }
 0x1f9   : > { %1682 = vpow2.f32 %v927_v47 }
 0x1fa   : > { %v876_v48 = vpop.f32.mrf.mxu2 }
 0x1fb   : > { %v2053_v49 = vadd.f32 %v1959_v51, %v876_v48  ;;  %v879_v51 = vld [vmem:[%s2064_s17] sm:$0xff] }
 0x1fd   : > { %v904_v50 = vmul.f32 0.5, %v2053_v49  ;;  %1419 = vst [vmem:[%s1964_s26 + $0xc0] sm:$0xff] %v2053_v49 }
 0x1ff   : > { %v1683_v52 = vpop.eup %1682  ;;  %v929_v54 = vmul.f32 1.442695, %v904_v50 }
 0x200   : > { %966 = vrot.lane.b32.xlu2 %v1683_v52, %s1746_s22 }
 0x201   : > { %1684 = vpow2.f32 %v929_v54 }
 0x207   : > { %v1685_v55 = vpop.eup %1684 }
 0x208   : > { %968 = vrot.lane.b32.xlu0 %v1685_v55, %s1746_s22 }
 0x214   : > { %v945_v56 = vpop.permute.xlu0 %944 }
 0x215   : > { %v983_v58 = vmul.f32 %v945_v56, %v879_v51 }
 0x217   : > { %v996_v59 = vadd.f32 %v983_v58, %v1967_v53 }
 0x219   : > { %1601 = vmatmul.msk.f32.vlgmr.msra.gmra.mxu1 %vm1014_vm2, %v996_v59 }
 0x21c   : > { %v953_v61 = vpop.permute.xlu2 %952  ;;  %v947_v63 = vpop.permute.xlu0 %946 }
 0x21d   : > { %v984_v0 = vmul.f32 %v947_v63, %v880_v60  ;;  %v987_v16 = vmul.f32 %v953_v61, %v883_v15 }
 0x21f   : > { %v997_v1 = vadd.f32 %v984_v0, %v1973_v57  ;;  %v882_v57 = vld [vmem:[%s2064_s17 + $0x18] sm:$0xff]  ;;  %v1000_v17 = vadd.f32 %v987_v16, %v1994_v8 }
 0x221   : > { %1602 = vmatmul.msk.f32.gmra.mxu1 %vm1014_vm2, %v997_v1 }
 0x224   : > { %v955_v5 = vpop.permute.xlu2 %954  ;;  %v949_v6 = vpop.permute.xlu1 %948 }
 0x225   : > { %v988_v7 = vmul.f32 %v955_v5, %v884_v2  ;;  %v985_v9 = vmul.f32 %v949_v6, %v881_v4 }
 0x227   : > { %v1001_v53 = vadd.f32 %v988_v7, %v2001_v13  ;;  %v998_v10 = vadd.f32 %v985_v9, %v1980_v62  ;;  %v885_v62 = vld [vmem:[%s2064_s17 + $0x30] sm:$0xff] }
 0x229   : > { %1603 = vmatmul.msk.f32.gmra.mxu1 %vm1014_vm2, %v998_v10  ;;  %1606 = vmatmul.msk.f32.vlgmr.msra.gmra.mxu3 %vm1014_vm2, %v1001_v53 }
 0x22c   : > { %v951_v11 = vpop.permute.xlu1 %950 }
 0x22d   : > { %v986_v12 = vmul.f32 %v951_v11, %v882_v57 }
 0x22f   : > { %v999_v14 = vadd.f32 %v986_v12, %v1987_v3 }
 0x231   : > { %1604 = vmatmul.msk.f32.gmra.mxu1 %vm1014_vm2, %v999_v14 }
 0x239   : > { %1605 = vmatmul.msk.f32.gmra.mxu1 %vm1014_vm2, %v1000_v17 }
 0x242   : > { %v961_v26 = vpop.permute.xlu2 %960 }
 0x243   : > { %v991_v8 = vmul.f32 %v961_v26, %v887_v25 }
 0x244   : > { %v957_v13 = vpop.permute.xlu0 %956 }
 0x245   : > { %v989_v19 = vmul.f32 %v957_v13, %v885_v62  ;;  %v1004_v27 = vadd.f32 %v991_v8, %v2022_v28 }
 0x247   : > { %v1002_v20 = vadd.f32 %v989_v19, %v2008_v18  ;;  %v888_v18 = vld [vmem:[%s2064_s17 + $0x48] sm:$0xff] }
 0x249   : > { %1607 = vmatmul.msk.f32.gmra.mxu3 %vm1014_vm2, %v1002_v20 }
 0x252   : > { %v959_v22 = vpop.permute.xlu1 %958 }
 0x253   : > { %v990_v3 = vmul.f32 %v959_v22, %v886_v21 }
 0x255   : > { %v1003_v23 = vadd.f32 %v990_v3, %v2016_v24 }
 0x257   : > { %1608 = vmatmul.msk.f32.gmra.mxu3 %vm1014_vm2, %v1003_v23 }
 0x25a   : > { %v967_v37 = vpop.permute.xlu2 %966 }
 0x25b   : > { %v994_v28 = vmul.f32 %v967_v37, %v890_v36  ;;  %v1238_v36 = vld [vmem:[%s2322_s10 + $0x58] sm:$0xff] }
 0x25d   : > { %v1007_v38 = vadd.f32 %v994_v28, %v2046_v44  ;;  %v1237_v28 = vld [vmem:[%s2322_s10 + $0x50] sm:$0xff] }
 0x25f   : > { %1609 = vmatmul.msk.f32.gmra.mxu3 %vm1014_vm2, %v1004_v27 }
 0x262   : > { %v963_v29 = vpop.permute.xlu0 %962 }
 0x263   : > { %v992_v30 = vmul.f32 %v963_v29, %v888_v18 }
 0x265   : > { %v1005_v31 = vadd.f32 %v992_v30, %v2029_v33  ;;  %v1242_v30 = vld [vmem:[%s2322_s10 + $0x78] sm:$0xff] }
 0x266   : > { %1247 = vmatpush.msrb.mxu3 %v1242_v30 }
 0x267   : > { %1610 = vmatmul.msk.f32.gmra.mxu3 %vm1014_vm2, %v1005_v31  ;;  %v1241_v31 = vld [vmem:[%s2322_s10 + $0x70] sm:$0xff] }
 0x268   : > { %1248 = vmatpush.msrb.mxu3 %v1241_v31 }
 0x26a   : > { %v965_v24 = vpop.permute.xlu1 %964 }
 0x26b   : > { %v993_v34 = vmul.f32 %v965_v24, %v889_v32  ;;  %v1240_v24 = vld [vmem:[%s2322_s10 + $0x68] sm:$0xff] }
 0x26c   : > { %1249 = vmatpush.msrb.mxu3 %v1240_v24 }
 0x26d   : > { %v1006_v35 = vadd.f32 %v993_v34, %v2039_v39  ;;  %v2108_v39 = vld [vmem:[%s2321_s9] ss:$0 sm:$0xff] }
 0x26e   : > { %v1239_v34 = vld [vmem:[%s2322_s10 + $0x60] sm:$0xff] }
 0x26f   : > { %1611 = vmatmul.msk.f32.gmra.mxu3 %vm1014_vm2, %v1006_v35 }
 0x270   : > { %1250 = vmatpush.msrb.mxu3 %v1239_v34 }
 0x272   : > { %1251 = vmatpush.msrb.mxu3 %v1238_v36  ;;  %v1634_v36 = vld [vmem:[%s2324_s12] sm:$0xff] }
 0x274   : > { %1252 = vmatpush.msrb.mxu3 %v1237_v28 }
 0x277   : > { %1612 = vmatmul.msk.f32.gmra.mxu3 %vm1014_vm2, %v1007_v38 }
 0x27a   : > { %v969_v41 = vpop.permute.xlu0 %968 }
 0x27b   : > { %v995_v42 = vmul.f32 %v969_v41, %v891_v40  ;;  %v1236_v40 = vld [vmem:[%s2322_s10 + $0x48] sm:$0xff]  ;;  %v1235_v41 = vld [vmem:[%s2322_s10 + $0x40] sm:$0xff] }
 0x27c   : > { %1253 = vmatpush.msrb.mxu3 %v1236_v40 }
 0x27d   : > { %v1008_v33 = vadd.f32 %v995_v42, %v2053_v49  ;;  %v1234_v42 = vld [vmem:[%s2322_s10 + $0x38] sm:$0xff] }
 0x27e   : > { %1254 = vmatpush.msrb.mxu3 %v1235_v41 }
 0x27f   : > { %1613 = vmatmul.msk.f32.gmra.mxu3 %vm1014_vm2, %v1008_v33  ;;  %v1233_v33 = vld [vmem:[%s2322_s10 + $0x30] sm:$0xff] }
 0x280   : > { %1255 = vmatpush.msrb.mxu3 %v1234_v42  ;;  %v2258_v42 = vld [vmem:[%s2323_s11] ss:$0 sm:$0xff] }
 0x282   : > { %1256 = vmatpush.msrb.mxu3 %v1233_v33 }
 0x296   : > { %v1071_v43 = vpop.f32.mrf.mxu1 }
 0x297   : > { %v1072_v45 = vadd.f32 %v2108_v39, %v1071_v43  ;;  %v1232_v43 = vld [vmem:[%s2322_s10 + $0x28] sm:$0xff] }
 0x298   : > { %1257 = vmatpush.msrb.mxu3 %v1232_v43 }
 0x299   : > { %1110 = vmax.xlane.f32.xlu1 %v1072_v45 }
 0x29e   : > { %v1074_v46 = vpop.f32.mrf.mxu1 }
 0x29f   : > { %v1075_v44 = vadd.f32 %v2108_v39, %v1074_v46 }
 0x2a1   : > { %1112 = vmax.xlane.f32.xlu2 %v1075_v44 }
 0x2a6   : > { %v1077_v47 = vpop.f32.mrf.mxu1 }
 0x2a7   : > { %v1078_v48 = vadd.f32 %v2108_v39, %v1077_v47 }
 0x2a9   : > { %1114 = vmax.xlane.f32.xlu0 %v1078_v48 }
 0x2ac   : > { %v1086_v52 = vpop.f32.mrf.mxu3 }
 0x2ad   : > { %v1087_v55 = vadd.f32 %v2108_v39, %v1086_v52  ;;  %v1228_v52 = vld [vmem:[%s2322_s10 + $0x8] sm:$0xff] }
 0x2ae   : > { %v1080_v49 = vpop.f32.mrf.mxu1 }
 0x2af   : > { %v1081_v50 = vadd.f32 %v2108_v39, %v1080_v49  ;;  %v1230_v49 = vld [vmem:[%s2322_s10 + $0x18] sm:$0xff] }
 0x2b1   : > { %1116 = vmax.xlane.f32.xlu2 %v1081_v50 }
 0x2b6   : > { %v1083_v54 = vpop.f32.mrf.mxu1 }
 0x2b7   : > { %v1084_v51 = vadd.f32 %v2108_v39, %v1083_v54  ;;  %v1227_v54 = vld [vmem:[%s2322_s10] sm:$0xff] }
 0x2b9   : > { %1118 = vmax.xlane.f32.xlu1 %v1084_v51  ;;  %1120 = vmax.xlane.f32.xlu2 %v1087_v55 }
 0x2cc   : > { %v1089_v56 = vpop.f32.mrf.mxu3 }
 0x2cd   : > { %v2117_v58 = vadd.f32 %v2108_v39, %v1089_v56 }
 0x2cf   : > { %1122 = vmax.xlane.f32.xlu0 %v2117_v58 }
 0x2da   : > { %v1092_v59 = vpop.f32.mrf.mxu3 }
 0x2db   : > { %v2121_v60 = vadd.f32 %v2108_v39, %v1092_v59 }
 0x2dd   : > { %1124 = vmax.xlane.f32.xlu2 %v2121_v60 }
 0x2e2   : > { %v1095_v1 = vpop.f32.mrf.mxu3 }
 0x2e3   : > { %v2128_v10 = vadd.f32 %v2108_v39, %v1095_v1 }
 0x2ea   : > { %v1098_v9 = vpop.f32.mrf.mxu3 }
 0x2eb   : > { %v2135_v15 = vadd.f32 %v2108_v39, %v1098_v9 }
 0x2f2   : > { %v1101_v17 = vpop.f32.mrf.mxu3 }
 0x2f3   : > { %v2142_v22 = vadd.f32 %v2108_v39, %v1101_v17 }
 0x2fa   : > { %v1104_v26 = vpop.f32.mrf.mxu3 }
 0x2fb   : > { %v2149_v8 = vadd.f32 %v2108_v39, %v1104_v26 }
 0x302   : > { %v1107_v29 = vpop.f32.mrf.mxu3 }
 0x303   : > { %v2165_v32 = vadd.f32 %v2108_v39, %v1107_v29 }
 0x30c   : > { %v1111_v61 = vpop.xlane.xlu1 %1110 }
 0x30d   : > { %v1136_v63 = vsub.f32 %v1072_v45, %v1111_v61 }
 0x30f   : > { %v1149_v0 = vmul.f32 1.442695, %v1136_v63 }
 0x311   : > { %1686 = vpow2.f32 %v1149_v0 }
 0x314   : > { %v1113_v2 = vpop.xlane.xlu2 %1112 }
 0x315   : > { %v1137_v4 = vsub.f32 %v1075_v44, %v1113_v2 }
 0x317   : > { %v2124_v5 = vpop.eup %1686  ;;  %v1151_v6 = vmul.f32 1.442695, %v1137_v4 }
 0x318   : > { %1175 = vadd.xlane.f32.xlu1 %v2124_v5 }
 0x319   : > { %1688 = vpow2.f32 %v1151_v6 }
 0x31c   : > { %v1115_v7 = vpop.xlane.xlu0 %1114 }
 0x31d   : > { %v1138_v53 = vsub.f32 %v1078_v48, %v1115_v7  ;;  %v1231_v48 = vld [vmem:[%s2322_s10 + $0x20] sm:$0xff] }
 0x31e   : > { %1258 = vmatpush.msrb.mxu3 %v1231_v48 }
 0x31f   : > { %v2130_v57 = vpop.eup %1688  ;;  %v1153_v11 = vmul.f32 1.442695, %v1138_v53 }
 0x320   : > { %1126 = vmax.xlane.f32.xlu1 %v2128_v10  ;;  %1177 = vadd.xlane.f32.xlu0 %v2130_v57 }
 0x321   : > { %1690 = vpow2.f32 %v1153_v11  ;;  %1259 = vmatpush.msrb.mxu3 %v1230_v49 }
 0x324   : > { %v1117_v12 = vpop.xlane.xlu2 %1116 }
 0x325   : > { %v1139_v14 = vsub.f32 %v1081_v50, %v1117_v12  ;;  %v1229_v50 = vld [vmem:[%s2322_s10 + $0x10] sm:$0xff] }
 0x326   : > { %1260 = vmatpush.msrb.mxu3 %v1229_v50 }
 0x327   : > { %v2137_v16 = vpop.eup %1690  ;;  %v1155_v62 = vmul.f32 1.442695, %v1139_v14 }
 0x328   : > { %1128 = vmax.xlane.f32.xlu0 %v2135_v15  ;;  %1179 = vadd.xlane.f32.xlu2 %v2137_v16 }
 0x329   : > { %1692 = vpow2.f32 %v1155_v62  ;;  %1261 = vmatpush.msrb.mxu3 %v1228_v52 }
 0x32b   : > { %1262 = vmatpush.msrb.mxu3 %v1227_v54 }
 0x32c   : > { %v1119_v13 = vpop.xlane.xlu1 %1118  ;;  %v1121_v19 = vpop.xlane.xlu2 %1120 }
 0x32d   : > { %v1140_v20 = vsub.f32 %v1084_v51, %v1119_v13  ;;  %v1141_v21 = vsub.f32 %v1087_v55, %v1121_v19 }
 0x32f   : > { %v2144_v3 = vpop.eup %1692  ;;  %v1157_v23 = vmul.f32 1.442695, %v1140_v20  ;;  %v1159_v25 = vmul.f32 1.442695, %v1141_v21 }
 0x330   : > { %1181 = vadd.xlane.f32.xlu1 %v2144_v3  ;;  %1130 = vmax.xlane.f32.xlu2 %v2142_v22 }
 0x331   : > { %1694 = vpow2.f32 %v1157_v23 }
 0x332   : > { %1696 = vpow2.f32 %v1159_v25 }
 0x337   : > { %v2151_v27 = vpop.eup %1694 }
 0x338   : > { %v2153_v18 = vpop.eup %1696  ;;  %1132 = vmax.xlane.f32.xlu1 %v2149_v8  ;;  %1183 = vadd.xlane.f32.xlu0 %v2151_v27 }
 0x339   : > { %1185 = vadd.xlane.f32.xlu2 %v2153_v18 }
 0x340   : > { %1134 = vmax.xlane.f32.xlu1 %v2165_v32 }
 0x342   : > { %v1123_v35 = vpop.xlane.xlu0 %1122 }
 0x343   : > { %v1142_v37 = vsub.f32 %v2117_v58, %v1123_v35  ;;  %v1635_v35 = vld [vmem:[%s2324_s12 + $0x8] sm:$0xff] }
 0x344   : > { %1370 = vmatpush.bf16.msrb.mxu2 %v1635_v35 }
 0x345   : > { %v1161_v38 = vmul.f32 1.442695, %v1142_v37 }
 0x347   : > { %1698 = vpow2.f32 %v1161_v38 }
 0x348   : > { %1371 = vmatpush.bf16.msrb.mxu2 %v1634_v36 }
 0x34d   : > { %v2193_v39 = vpop.eup %1698 }
 0x34e   : > { %1187 = vadd.xlane.f32.xlu0 %v2193_v39 }
 0x350   : > { %v1125_v45 = vpop.xlane.xlu2 %1124 }
 0x351   : > { %v1143_v46 = vsub.f32 %v2121_v60, %v1125_v45 }
 0x353   : > { %v1163_v44 = vmul.f32 1.442695, %v1143_v46 }
 0x355   : > { %1700 = vpow2.f32 %v1163_v44 }
 0x35b   : > { %v2200_v47 = vpop.eup %1700 }
 0x35c   : > { %1189 = vadd.xlane.f32.xlu2 %v2200_v47 }
 0x38b   : > { %v1176_v55 = vpop.xlane.xlu1 %1175 }
 0x38c   : > { %1702 = vrcp.f32 %v1176_v55 }
 0x392   : > { %v1703_v51 = vpop.eup %1702 }
 0x393   : > { %v1127_v56 = vpop.xlane.xlu1 %1126  ;;  %v1178_v58 = vpop.xlane.xlu0 %1177  ;;  %v1214_v59 = vmul.f32 %v1703_v51, %v2124_v5 }
 0x394   : > { %v1144_v60 = vsub.f32 %v2128_v10, %v1127_v56  ;;  %1704 = vrcp.f32 %v1178_v58 }
 0x395   : > { %1263 = vmatmul.f32.vlgmr.msrb.gmra.mxu3 %v1214_v59  ;;  %1420 = vst [vmem:[%s1964_s26 + $0x8] sm:$0xff] %v1214_v59 }
 0x396   : > { %v1165_v61 = vmul.f32 1.442695, %v1144_v60 }
 0x398   : > { %1706 = vpow2.f32 %v1165_v61 }
 0x39a   : > { %v1705_v63 = vpop.eup %1704 }
 0x39b   : > { %v1180_v0 = vpop.xlane.xlu2 %1179  ;;  %v1129_v1 = vpop.xlane.xlu0 %1128  ;;  %v1215_v2 = vmul.f32 %v1705_v63, %v2130_v57 }
 0x39c   : > { %1708 = vrcp.f32 %v1180_v0  ;;  %v1145_v4 = vsub.f32 %v2135_v15, %v1129_v1 }
 0x39d   : > { %1266 = vmatmul.f32.gmra.mxu3 %v1215_v2  ;;  %1421 = vst [vmem:[%s1964_s26 + $0x18] sm:$0xff] %v1215_v2 }
 0x39e   : > { %v2224_v6 = vpop.eup %1706  ;;  %v1167_v5 = vmul.f32 1.442695, %v1145_v4 }
 0x39f   : > { %1191 = vadd.xlane.f32.xlu0 %v2224_v6 }
 0x3a0   : > { %1710 = vpow2.f32 %v1167_v5 }
 0x3a2   : > { %v1709_v7 = vpop.eup %1708 }
 0x3a3   : > { %v1182_v9 = vpop.xlane.xlu1 %1181  ;;  %v1131_v53 = vpop.xlane.xlu2 %1130  ;;  %v1216_v10 = vmul.f32 %v1709_v7, %v2137_v16 }
 0x3a4   : > { %1712 = vrcp.f32 %v1182_v9  ;;  %v1146_v57 = vsub.f32 %v2142_v22, %v1131_v53 }
 0x3a5   : > { %1269 = vmatmul.f32.gmra.mxu3 %v1216_v10  ;;  %1422 = vst [vmem:[%s1964_s26 + $0x28] sm:$0xff] %v1216_v10 }
 0x3a6   : > { %v2230_v11 = vpop.eup %1710  ;;  %v1169_v12 = vmul.f32 1.442695, %v1146_v57 }
 0x3a7   : > { %1193 = vadd.xlane.f32.xlu1 %v2230_v11 }
 0x3a8   : > { %1714 = vpow2.f32 %v1169_v12 }
 0x3aa   : > { %v1713_v14 = vpop.eup %1712 }
 0x3ab   : > { %v1133_v15 = vpop.xlane.xlu1 %1132  ;;  %v1184_v17 = vpop.xlane.xlu0 %1183  ;;  %v1217_v62 = vmul.f32 %v1713_v14, %v2144_v3 }
 0x3ac   : > { %v1147_v13 = vsub.f32 %v2149_v8, %v1133_v15  ;;  %v1186_v16 = vpop.xlane.xlu2 %1185  ;;  %1716 = vrcp.f32 %v1184_v17 }
 0x3ad   : > { %1718 = vrcp.f32 %v1186_v16  ;;  %1272 = vmatmul.f32.gmra.mxu3 %v1217_v62  ;;  %1423 = vst [vmem:[%s1964_s26 + $0x38] sm:$0xff] %v1217_v62 }
 0x3ae   : > { %v1715_v19 = vpop.eup %1714  ;;  %v1171_v20 = vmul.f32 1.442695, %v1147_v13 }
 0x3af   : > { %1195 = vadd.xlane.f32.xlu2 %v1715_v19 }
 0x3b0   : > { %1720 = vpow2.f32 %v1171_v20 }
 0x3b2   : > { %v1717_v21 = vpop.eup %1716 }
 0x3b3   : > { %v1719_v22 = vpop.eup %1718  ;;  %v1135_v23 = vpop.xlane.xlu1 %1134  ;;  %v1218_v25 = vmul.f32 %v1717_v21, %v2151_v27  ;;  %v1659_v21 = vld [vmem:[%s2325_s13] ss:$0 sm:$0xff] }
 0x3b4   : > { %v1148_v3 = vsub.f32 %v2165_v32, %v1135_v23  ;;  %v1219_v26 = vmul.f32 %v1719_v22, %v2153_v18 }
 0x3b5   : > { %1275 = vmatmul.f32.gmra.mxu3 %v1218_v25  ;;  %1424 = vst [vmem:[%s1964_s26 + $0x48] sm:$0xff] %v1218_v25 }
 0x3b6   : > { %v1721_v8 = vpop.eup %1720  ;;  %v1173_v29 = vmul.f32 1.442695, %v1148_v3  ;;  %1425 = vst [vmem:[%s1964_s26 + $0x58] sm:$0xff] %v1219_v26 }
 0x3b7   : > { %1197 = vadd.xlane.f32.xlu0 %v1721_v8 }
 0x3b8   : > { %1722 = vpow2.f32 %v1173_v29 }
 0x3bd   : > { %1278 = vmatmul.f32.gmra.mxu3 %v1219_v26 }
 0x3be   : > { %v2241_v30 = vpop.eup %1722 }
 0x3bf   : > { %1199 = vadd.xlane.f32.xlu1 %v2241_v30 }
 0x3c1   : > { %v1188_v31 = vpop.xlane.xlu0 %1187 }
 0x3c2   : > { %1724 = vrcp.f32 %v1188_v31 }
 0x3c8   : > { %v1725_v27 = vpop.eup %1724 }
 0x3c9   : > { %v1220_v32 = vmul.f32 %v1725_v27, %v2193_v39 }
 0x3cb   : > { %1281 = vmatmul.f32.gmra.mxu3 %v1220_v32  ;;  %1426 = vst [vmem:[%s1964_s26 + $0x68] sm:$0xff] %v1220_v32 }
 0x3cf   : > { %v1190_v18 = vpop.xlane.xlu2 %1189 }
 0x3d0   : > { %1726 = vrcp.f32 %v1190_v18 }
 0x3d6   : > { %v1727_v24 = vpop.eup %1726 }
 0x3d7   : > { %v1221_v34 = vmul.f32 %v1727_v24, %v2200_v47 }
 0x3d9   : > { %1284 = vmatmul.f32.gmra.mxu3 %v1221_v34  ;;  %1427 = vst [vmem:[%s1964_s26 + $0x78] sm:$0xff] %v1221_v34 }
 0x412   : > { %v1192_v37 = vpop.xlane.xlu0 %1191 }
 0x413   : > { %1728 = vrcp.f32 %v1192_v37 }
 0x418   : > { %v1264_v28 = vpop.f32.mrf.mxu3 }
 0x419   : > { %v1729_v38 = vpop.eup %1728  ;;  %v1265_v33 = vadd.f32 %v2258_v42, %v1264_v28 }
 0x41a   : > { %v1194_v40 = vpop.xlane.xlu1 %1193  ;;  %v1222_v41 = vmul.f32 %v1729_v38, %v2224_v6 }
 0x41b   : > { %1730 = vrcp.f32 %v1194_v40  ;;  %v1303_v47 = vmax.f32 %v1265_v33, 0.0 }
 0x41c   : > { %1287 = vmatmul.f32.gmra.mxu3 %v1222_v41  ;;  %1428 = vst [vmem:[%s1964_s26 + $0x88] sm:$0xff] %v1222_v41 }
 0x420   : > { %v1267_v39 = vpop.f32.mrf.mxu3 }
 0x421   : > { %v1731_v43 = vpop.eup %1730  ;;  %v1268_v45 = vadd.f32 %v2258_v42, %v1267_v39 }
 0x422   : > { %v1196_v46 = vpop.xlane.xlu2 %1195  ;;  %v1223_v44 = vmul.f32 %v1731_v43, %v2230_v11 }
 0x423   : > { %v1304_v48 = vmax.f32 %v1268_v45, 0.0  ;;  %1732 = vrcp.f32 %v1196_v46 }
 0x424   : > { %1290 = vmatmul.f32.gmra.mxu3 %v1223_v44  ;;  %1429 = vst [vmem:[%s1964_s26 + $0x98] sm:$0xff] %v1223_v44 }
 0x425   : > { %v1316_v49 = vpack.c.bf16 %v1304_v48, %v1303_v47 }
 0x427   : > { %1622 = vmatmul.msk.bf16.vlgmr.msrb.gmra.mxu2 %vm577_vm0, %v1316_v49 }
 0x428   : > { %v1270_v50 = vpop.f32.mrf.mxu3 }
 0x429   : > { %v1733_v52 = vpop.eup %1732  ;;  %v1271_v51 = vadd.f32 %v2258_v42, %v1270_v50 }
 0x42a   : > { %v1198_v54 = vpop.xlane.xlu0 %1197  ;;  %v1224_v55 = vmul.f32 %v1733_v52, %v1715_v19 }
 0x42b   : > { %1734 = vrcp.f32 %v1198_v54  ;;  %v1305_v63 = vmax.f32 %v1271_v51, 0.0 }
 0x42c   : > { %1293 = vmatmul.f32.gmra.mxu3 %v1224_v55  ;;  %1430 = vst [vmem:[%s1964_s26 + $0xa8] sm:$0xff] %v1224_v55 }
 0x430   : > { %v1273_v56 = vpop.f32.mrf.mxu3 }
 0x431   : > { %v1735_v58 = vpop.eup %1734  ;;  %v1274_v59 = vadd.f32 %v2258_v42, %v1273_v56 }
 0x432   : > { %v1200_v60 = vpop.xlane.xlu1 %1199  ;;  %v1225_v61 = vmul.f32 %v1735_v58, %v1721_v8 }
 0x433   : > { %v1306_v0 = vmax.f32 %v1274_v59, 0.0  ;;  %1736 = vrcp.f32 %v1200_v60 }
 0x434   : > { %1296 = vmatmul.f32.gmra.mxu3 %v1225_v61  ;;  %1431 = vst [vmem:[%s1964_s26 + $0xb8] sm:$0xff] %v1225_v61 }
 0x435   : > { %v1317_v1 = vpack.c.bf16 %v1306_v0, %v1305_v63 }
 0x437   : > { %1623 = vmatmul.msk.bf16.gmra.mxu2 %vm577_vm0, %v1317_v1 }
 0x438   : > { %v1276_v2 = vpop.f32.mrf.mxu3 }
 0x439   : > { %v1737_v4 = vpop.eup %1736  ;;  %v1277_v5 = vadd.f32 %v2258_v42, %v1276_v2 }
 0x43a   : > { %v1226_v6 = vmul.f32 %v1737_v4, %v2241_v30 }
 0x43b   : > { %v1307_v53 = vmax.f32 %v1277_v5, 0.0 }
 0x43c   : > { %1299 = vmatmul.f32.gmra.mxu3 %v1226_v6  ;;  %1432 = vst [vmem:[%s1964_s26 + $0xc8] sm:$0xff] %v1226_v6 }
 0x440   : > { %v1279_v7 = vpop.f32.mrf.mxu3 }
 0x441   : > { %v1280_v9 = vadd.f32 %v2258_v42, %v1279_v7 }
 0x443   : > { %v1308_v10 = vmax.f32 %v1280_v9, 0.0 }
 0x445   : > { %v1318_v57 = vpack.c.bf16 %v1308_v10, %v1307_v53 }
 0x447   : > { %1624 = vmatmul.msk.bf16.gmra.mxu2 %vm577_vm0, %v1318_v57 }
 0x44e   : > { %v1282_v11 = vpop.f32.mrf.mxu3 }
 0x44f   : > { %v1283_v12 = vadd.f32 %v2258_v42, %v1282_v11 }
 0x451   : > { %v1309_v17 = vmax.f32 %v1283_v12, 0.0 }
 0x45c   : > { %v1285_v14 = vpop.f32.mrf.mxu3 }
 0x45d   : > { %v1286_v15 = vadd.f32 %v2258_v42, %v1285_v14 }
 0x45f   : > { %v1310_v62 = vmax.f32 %v1286_v15, 0.0 }
 0x461   : > { %v1319_v13 = vpack.c.bf16 %v1310_v62, %v1309_v17 }
 0x463   : > { %1625 = vmatmul.msk.bf16.gmra.mxu2 %vm577_vm0, %v1319_v13 }
 0x49f   : > { %v1288_v16 = vpop.f32.mrf.mxu3 }
 0x4a0   : > { %v1289_v19 = vadd.f32 %v2258_v42, %v1288_v16 }
 0x4a2   : > { %v1311_v23 = vmax.f32 %v1289_v19, 0.0 }
 0x4a7   : > { %v1291_v20 = vpop.f32.mrf.mxu3 }
 0x4a8   : > { %v1292_v22 = vadd.f32 %v2258_v42, %v1291_v20 }
 0x4aa   : > { %v1312_v25 = vmax.f32 %v1292_v22, 0.0  ;;  %v1373_v3 = vpop.f32.mrf.mxu2 }
 0x4ab   : > { %v1374_v26 = vadd.f32 %v1659_v21, %v1373_v3 }
 0x4ac   : > { %v1320_v8 = vpack.c.bf16 %v1312_v25, %v1311_v23 }
 0x4ad   : > { %1433 = vst [vmem:[%s2288_s27] sm:$0xff] %v1374_v26 }
 0x4ae   : > { %1626 = vmatmul.msk.bf16.gmra.mxu2 %vm577_vm0, %v1320_v8 }
 0x4af   : > { %v1294_v29 = vpop.f32.mrf.mxu3 }
 0x4b0   : > { %v1295_v27 = vadd.f32 %v2258_v42, %v1294_v29 }
 0x4b2   : > { %v1375_v30 = vpop.f32.mrf.mxu2  ;;  %v1313_v24 = vmax.f32 %v1295_v27, 0.0 }
 0x4b3   : > { %v1376_v31 = vadd.f32 %v1659_v21, %v1375_v30 }
 0x4b5   : > { %1434 = vst [vmem:[%s2288_s27 + $0x8] sm:$0xff] %v1376_v31 }
 0x4b7   : > { %v1297_v32 = vpop.f32.mrf.mxu3 }
 0x4b8   : > { %v1298_v18 = vadd.f32 %v2258_v42, %v1297_v32 }
 0x4ba   : > { %v1314_v34 = vmax.f32 %v1298_v18, 0.0  ;;  %v1378_v35 = vpop.f32.mrf.mxu2 }
 0x4bb   : > { %v1379_v36 = vadd.f32 %v1659_v21, %v1378_v35 }
 0x4bc   : > { %v1321_v37 = vpack.c.bf16 %v1314_v34, %v1313_v24 }
 0x4bd   : > { %1435 = vst [vmem:[%s2288_s27 + $0x10] sm:$0xff] %v1379_v36 }
 0x4be   : > { %1627 = vmatmul.msk.bf16.gmra.mxu2 %vm577_vm0, %v1321_v37 }
 0x4bf   : > { %v1300_v28 = vpop.f32.mrf.mxu3 }
 0x4c0   : > { %v1301_v41 = vadd.f32 %v2258_v42, %v1300_v28 }
 0x4c2   : > { %v1380_v38 = vpop.f32.mrf.mxu2  ;;  %v1315_v33 = vmax.f32 %v1301_v41, 0.0 }
 0x4c3   : > { %v1381_v40 = vadd.f32 %v1659_v21, %v1380_v38 }
 0x4c4   : > { %v1322_v45 = vpack.c.bf16 %v1315_v33, %v1315_v33 }
 0x4c5   : > { %1436 = vst [vmem:[%s2288_s27 + $0x18] sm:$0xff] %v1381_v40 }
 0x4ca   : > { %v1383_v39 = vpop.f32.mrf.mxu2 }
 0x4cb   : > { %v1384_v43 = vadd.f32 %v1659_v21, %v1383_v39 }
 0x4cd   : > { %1437 = vst [vmem:[%s2288_s27 + $0x20] sm:$0xff] %v1384_v43 }
 0x4ce   : > { %1628 = vmatmul.msk.bf16.gmra.mxu2 %vm577_vm0, %v1322_v45 }
 0x4d2   : > { %v1385_v46 = vpop.f32.mrf.mxu2 }
 0x4d3   : > { %v1386_v44 = vadd.f32 %v1659_v21, %v1385_v46 }
 0x4d5   : > { %1438 = vst [vmem:[%s2288_s27 + $0x28] sm:$0xff] %v1386_v44 }
 0x4e6   : > { %v1388_v47 = vpop.f32.mrf.mxu2 }
 0x4e7   : > { %v1389_v48 = vadd.f32 %v1659_v21, %v1388_v47 }
 0x4e9   : > { %1439 = vst [vmem:[%s2288_s27 + $0x30] sm:$0xff] %v1389_v48 }
 0x4ee   : > { %v1390_v42 = vpop.f32.mrf.mxu2 }
 0x4ef   : > { %v1391_v49 = vadd.f32 %v1659_v21, %v1390_v42 }
 0x4f1   : > { %1440 = vst [vmem:[%s2288_s27 + $0x38] sm:$0xff] %v1391_v49 }
 0x531   : > { %v1393_v50 = vpop.f32.mrf.mxu2 }
 0x532   : > { %v1394_v52 = vadd.f32 %v1659_v21, %v1393_v50 }
 0x534   : > { %1441 = vst [vmem:[%s2288_s27 + $0x40] sm:$0xff] %v1394_v52 }
 0x539   : > { %v1395_v54 = vpop.f32.mrf.mxu2 }
 0x53a   : > { %v1396_v55 = vadd.f32 %v1659_v21, %v1395_v54 }
 0x53c   : > { %1442 = vst [vmem:[%s2288_s27 + $0x48] sm:$0xff] %v1396_v55 }
 0x541   : > { %v1398_v51 = vpop.f32.mrf.mxu2 }
 0x542   : > { %v1399_v56 = vadd.f32 %v1659_v21, %v1398_v51 }
 0x544   : > { %1443 = vst [vmem:[%s2288_s27 + $0x50] sm:$0xff] %v1399_v56 }
 0x549   : > { %v1400_v58 = vpop.f32.mrf.mxu2 }
 0x54a   : > { %v1401_v59 = vadd.f32 %v1659_v21, %v1400_v58 }
 0x54c   : > { %1444 = vst [vmem:[%s2288_s27 + $0x58] sm:$0xff] %v1401_v59 }
 0x551   : > { %v1403_v60 = vpop.f32.mrf.mxu2 }
 0x552   : > { %v1404_v61 = vadd.f32 %v1659_v21, %v1403_v60 }
 0x554   : > { %1445 = vst [vmem:[%s2288_s27 + $0x60] sm:$0xff] %v1404_v61 }
 0x559   : > { %v1405_v63 = vpop.f32.mrf.mxu2 }
 0x55a PF: > { %s26_s18 = sadd.s32 1, %s1744_s18  }
 0x55b   : > { %p23_p4 = scmp.ge.s32.totalorder %s26_s18, 4  }
 0x55d   :  { %25 = sbr.rel (!%p23_p4) target bundleno = 1 (0x1), region = 121 }

</bundles_post_ra>
